<compile_context>
chip_gen: v7x
topology: tpu7x:2x2x1
jax: 0.10.0
libtpu: 0.0.40
codegen_flags: <defaults>
</compile_context>

<pallas_src>
import numpy as np
import jax
import jax.numpy as jnp
from jax.experimental import pallas as pl
from jax.experimental.pallas import tpu as pltpu

# ---------------- deterministic in-script "config" ----------------
B = 2
OBJ_TOKEN = 8                      # number of object queries N
RLN_TOKEN = 1
TOKENS = OBJ_TOKEN + RLN_TOKEN     # T
HIDDEN = 32
NUM_EDGES = 80
M_MAX = B * OBJ_TOKEN              # static upper bound on matched pairs
E_MAX = B * NUM_EDGES              # static upper bound on sampled edges
WEIGHT_DICT = {'boxes': 2.0, 'class': 3.0, 'cards': 1.0, 'nodes': 5.0, 'edges': 4.0}
LOSSES = ['boxes', 'class', 'nodes', 'edges', 'cards']
_EPS = 1e-12


def _vmem_spec():
    return pl.BlockSpec(memory_space=pltpu.MemorySpace.VMEM)


def _sum2d(x):
    """Full reduction of a 2-D value to shape (1, 1)."""
    return jnp.sum(jnp.sum(x, axis=1, keepdims=True), axis=0, keepdims=True)


def _softplus(x):
    # numerically stable log(1 + exp(x)); exp/log land on the EUP slot
    return jnp.maximum(x, 0.0) + jnp.log(1.0 + jnp.exp(-jnp.abs(x)))


# ---------------- fused Pallas kernel ----------------
def _fused_criterion_kernel(cls_ref, nb_ref, fe_ref, w1t_ref, w2t_ref, bw_ref,
                            out_ref):
    # ----- class + cardinality (packed [2B, N]: rows 0..B-1 logit-diff, B..2B-1 targets) -----
    cls = cls_ref[...]
    b_sz = cls_ref.shape[0] // 2
    n_sz = cls_ref.shape[1]
    d = cls[0:b_sz, :]                                        # [B, N] logit diff l1-l0
    t = cls[b_sz:2 * b_sz, :]                                 # [B, N] 0/1 match target
    # 2-class weighted CE == weighted BCE on the logit diff
    nll = t * _softplus(-d) + (1.0 - t) * _softplus(d)
    w = 0.2 + 0.6 * t                                         # class weights [0.2, 0.8]
    class_loss = _sum2d(w * nll) / _sum2d(w)                  # (1, 1), weighted 'mean'

    # cardinality: argmax(logits,-1)==last class; first-index tie-break -> (l1 > l0)
    pred_last = (d > 0.0).astype(jnp.float32)
    card_pred = jnp.sum(pred_last, axis=1, keepdims=True)     # [B, 1]
    tgt_len = jnp.sum(t, axis=1, keepdims=True)               # [B, 1]
    card_loss = (jnp.sum(jnp.abs(card_pred - tgt_len), axis=0, keepdims=True)
                 / float(b_sz * n_sz))                        # (1, 1)

    # ----- nodes (L1) + boxes (GIoU): transposed [9, M_MAX] pack -----
    nb = nb_ref[...]                                          # [9, M_MAX]
    scx, scy, sw, sh = nb[0:1, :], nb[1:2, :], nb[2:3, :], nb[3:4, :]
    tcx, tcy, tw, th = nb[4:5, :], nb[5:6, :], nb[6:7, :], nb[7:8, :]
    nm = nb[8:9, :]                                           # validity mask [1, M_MAX]
    num_nodes = jnp.maximum(_sum2d(nm), 1.0)
    nodes_loss = _sum2d(nm * (jnp.abs(scx - tcx) + jnp.abs(scy - tcy))) / num_nodes

    sx0, sy0 = scx - 0.5 * sw, scy - 0.5 * sh
    sx1, sy1 = scx + 0.5 * sw, scy + 0.5 * sh
    tx0, ty0 = tcx - 0.5 * tw, tcy - 0.5 * th
    tx1, ty1 = tcx + 0.5 * tw, tcy + 0.5 * th
    area_s = (sx1 - sx0) * (sy1 - sy0)
    area_t = (tx1 - tx0) * (ty1 - ty0)
    iw = jnp.maximum(jnp.minimum(sx1, tx1) - jnp.maximum(sx0, tx0), 0.0)
    ih = jnp.maximum(jnp.minimum(sy1, ty1) - jnp.maximum(sy0, ty0), 0.0)
    inter = iw * ih
    union = area_s + area_t - inter
    iou = inter / jnp.maximum(union, _EPS)
    ew = jnp.maximum(sx1, tx1) - jnp.minimum(sx0, tx0)
    eh = jnp.maximum(sy1, ty1) - jnp.minimum(sy0, ty0)
    earea = ew * eh
    giou = iou - (earea - union) / jnp.maximum(earea, _EPS)
    boxes_loss = _sum2d(nm * (1.0 - giou)) / num_nodes

    # ----- edges: relation_embed MLP (MXU) + masked-mean CE, all lane-dense -----
    three_h = fe_ref.shape[0] - 2
    feat_t = fe_ref[0:three_h, :]                             # [3H, E_MAX]
    y = fe_ref[three_h:three_h + 1, :]                        # [1, E_MAX] labels
    em = fe_ref[three_h + 1:three_h + 2, :]                   # [1, E_MAX] mask

    bw = bw_ref[...]                                          # [H, 4]: b1 | b2 | w3d | b3d
    b1c, b2c, w3dc = bw[:, 0:1], bw[:, 1:2], bw[:, 2:3]
    b3d = bw[0:1, 3:4]

    h1 = jnp.maximum(
        jnp.dot(w1t_ref[...], feat_t, preferred_element_type=jnp.float32) + b1c, 0.0)
    h2 = jnp.maximum(
        jnp.dot(w2t_ref[...], h1, preferred_element_type=jnp.float32) + b2c, 0.0)
    # logit diff: broadcast-multiply + sublane reduce (lane-dense [1, E_MAX] result)
    de = jnp.sum(w3dc * h2, axis=0, keepdims=True) + b3d
    nll_e = y * _softplus(-de) + (1.0 - y) * _softplus(de)
    edges_loss = _sum2d(em * nll_e) / jnp.maximum(_sum2d(em), 1.0)

    loss_map = {'class': class_loss, 'nodes': nodes_loss, 'boxes': boxes_loss,
                'edges': edges_loss, 'cards': card_loss}
    total = sum(loss_map[k] * WEIGHT_DICT[k] for k in LOSSES)

    # single packed (1, 8) store: [class, nodes, boxes, edges, cards, total, 0, 0]
    lane = jax.lax.broadcasted_iota(jnp.int32, (1, 8), 1)
    vals = (class_loss, nodes_loss, boxes_loss, edges_loss, card_loss, total)
    row = jnp.zeros((1, 8), jnp.float32)
    for i, v in enumerate(vals):
        row = row + jnp.where(lane == i, v, 0.0)
    out_ref[...] = row


# ---------------- one jitted device function: gathers + packing + fused kernel ----------------
@jax.jit
def _device_losses(h, pred_logits, pred_nodes, tmatch, src_idx, tgt_t, node_mask,
                   e_idx, e_lab, e_mask, w1, b1, w2, b2, w3, b3):
    # class pack: [2B, N] = logit-diff rows | target rows
    d = pred_logits[..., 1] - pred_logits[..., 0]             # [B, N]
    cls_pack = jnp.concatenate([d, tmatch], axis=0)           # [2B, N]

    # matched-box pack: [9, M_MAX] = srcT(4) | tgtT(4) | mask(1)
    src = jnp.take(pred_nodes.reshape(B * OBJ_TOKEN, 4), src_idx, axis=0)  # [M_MAX, 4]
    nb_pack = jnp.concatenate([src.T, tgt_t, node_mask], axis=0)           # [9, M_MAX]

    # edge features transposed + labels + mask: [3H+2, E_MAX]
    h_flat = h.reshape(B * TOKENS, HIDDEN)
    f0 = jnp.take(h_flat, e_idx[0], axis=0)                   # [E_MAX, H]
    f1 = jnp.take(h_flat, e_idx[1], axis=0)
    fr = jnp.take(h_flat, e_idx[2], axis=0)
    fe_pack = jnp.concatenate(
        [f0.T, f1.T, fr.T, e_lab[None, :], e_mask[None, :]], axis=0)       # [3H+2, E_MAX]

    # weights transposed; fold the [H, 2] output layer into a logit-diff column
    w1_t = w1.T                                               # [H, 3H]
    w2_t = w2.T                                               # [H, H]
    w3d_col = w3[:, 1:2] - w3[:, 0:1]                         # [H, 1]
    b3d = b3[0, 1] - b3[0, 0]                                 # scalar
    bw_pack = jnp.concatenate(
        [b1.T, b2.T, w3d_col, jnp.full((HIDDEN, 1), b3d, jnp.float32)], axis=1)  # [H, 4]

    return pl.pallas_call(
        _fused_criterion_kernel,
        out_shape=jax.ShapeDtypeStruct((1, 8), jnp.float32),
        in_specs=[_vmem_spec()] * 6,
        out_specs=_vmem_spec(),
    )(cls_pack, nb_pack, fe_pack, w1_t, w2_t, bw_pack)


# ---------------- host-side glue (deterministic) ----------------
def greedy_matcher(pred_nodes_host, tgt_nodes):
    # TODO(synk): Hungarian matcher (scipy linear_sum_assignment) replaced by a
    # deterministic greedy L1 matcher; the matcher is an injected dependency and
    # has no clean Pallas equivalent (data-dependent combinatorial host logic).
    indices = []
    for b, tgt in enumerate(tgt_nodes):
        cost = np.abs(pred_nodes_host[b, :, None, :2] - tgt[None, :, :]).sum(-1)  # [N, n]
        used, src_sel, tgt_sel = set(), [], []
        for j in range(tgt.shape[0]):
            for i in np.argsort(cost[:, j]):
                if int(i) not in used:
                    used.add(int(i))
                    src_sel.append(int(i))
                    tgt_sel.append(j)
                    break
        indices.append((np.array(src_sel, np.int64), np.array(tgt_sel, np.int64)))
    return indices


def set_criterion_forward(h, pred_logits, pred_nodes, tgt_nodes, tgt_edges, params):
    # single blocking D2H transfer (needed by the host-side matcher)
    pred_nodes_host = np.asarray(pred_nodes)
    indices = greedy_matcher(pred_nodes_host, tgt_nodes)

    # -------- pack all static-shape side inputs once in numpy --------
    tmatch = np.zeros((B, OBJ_TOKEN), np.float32)
    src_idx = np.zeros((M_MAX,), np.int32)
    tgt_t = np.zeros((4, M_MAX), np.float32)            # transposed target boxes
    tgt_t[0, :] = 0.5
    tgt_t[1, :] = 0.5
    tgt_t[2, :] = 0.15
    tgt_t[3, :] = 0.15
    node_mask = np.zeros((1, M_MAX), np.float32)
    e_idx = np.zeros((3, E_MAX), np.int32)               # [e0 token, e1 token, rln token]
    e_lab = np.zeros((E_MAX,), np.float32)
    e_mask = np.zeros((E_MAX,), np.float32)

    cur_m, cur_e = 0, 0
    for b, (src, tgt) in enumerate(indices):
        # class targets
        tmatch[b, src] = 1.0

        # matched node/box pairs (coords on sublanes, pairs on lanes)
        m = src.shape[0]
        src_idx[cur_m:cur_m + m] = b * OBJ_TOKEN + src
        tgt_t[0:2, cur_m:cur_m + m] = tgt_nodes[b][tgt].T
        tgt_t[2:4, cur_m:cur_m + m] = 0.15
        node_mask[0, cur_m:cur_m + m] = 1.0
        cur_m += m

        # edge sampling (deterministic)
        tgt_list = [int(x) for x in tgt]
        tset = set(tgt_list)
        pos = np.array([ed for ed in tgt_edges[b]
                        if int(ed[0]) in tset and int(ed[1]) in tset],
                       np.int64).reshape(-1, 2)
        remap = {k: idx for idx, k in enumerate(tgt_list)}
        pos = np.array([[remap[int(a)], remap[int(c)]] for a, c in pos],
                       np.int64).reshape(-1, 2)
        n = tgt_nodes[b].shape[0]
        adj = np.ones((n, n)) - np.eye(n)
        if pos.shape[0] > 0:
            adj[pos[:, 0], pos[:, 1]] = 0
            adj[pos[:, 1], pos[:, 0]] = 0
        neg = np.argwhere(np.triu(adj) > 0).astype(np.int64)
        # TODO(synk): the np.random edge-direction shuffles and torch.randperm of
        # negative edges are stochastic host RNG with no Pallas equivalent; they are
        # omitted (deterministic ordering kept).
        pos = pos[:40]
        take_neg = int(min(NUM_EDGES - pos.shape[0], neg.shape[0]))
        total = pos.shape[0] + take_neg
        all_e = np.concatenate([pos, neg[:take_neg]], axis=0)
        all_e = np.clip(all_e, 0, m - 1)
        e_idx[0, cur_e:cur_e + total] = b * TOKENS + src[all_e[:, 0]]
        e_idx[1, cur_e:cur_e + total] = b * TOKENS + src[all_e[:, 1]]
        e_idx[2, cur_e:cur_e + total] = b * TOKENS + OBJ_TOKEN   # relation token
        e_lab[cur_e:cur_e + pos.shape[0]] = 1.0
        e_mask[cur_e:cur_e + total] = 1.0
        cur_e += total

    out = _device_losses(h, pred_logits, pred_nodes,
                         tmatch, src_idx, tgt_t, node_mask,
                         e_idx, e_lab, e_mask,
                         params['w1'], params['b1'], params['w2'], params['b2'],
                         params['w3'], params['b3'])

    keys = ('class', 'nodes', 'boxes', 'edges', 'cards', 'total')
    return {k: out[0, i] for i, k in enumerate(keys)}


if __name__ == "__main__":
    key = jax.random.PRNGKey(0)
    ks = jax.random.split(key, 6)

    # model outputs
    h = jax.random.normal(ks[0], (B, TOKENS, HIDDEN), jnp.float32)
    pred_logits = jax.random.normal(ks[1], (B, OBJ_TOKEN, 2), jnp.float32)
    pred_nodes = jax.nn.sigmoid(
        jax.random.normal(ks[2], (B, OBJ_TOKEN, 4), jnp.float32))

    # deterministic targets: 5 nodes per image, path-graph edges
    rng = np.random.RandomState(0)
    tgt_nodes = [rng.rand(5, 2).astype(np.float32) for _ in range(B)]
    tgt_edges = [np.array([[0, 1], [1, 2], [2, 3], [3, 4]], np.int64) for _ in range(B)]

    # relation_embed MLP params: Linear(3H->H) -> ReLU -> Linear(H->H) -> ReLU -> Linear(H->2)
    params = {
        'w1': 0.1 * jax.random.normal(ks[3], (3 * HIDDEN, HIDDEN), jnp.float32),
        'b1': jnp.zeros((1, HIDDEN), jnp.float32),
        'w2': 0.1 * jax.random.normal(ks[4], (HIDDEN, HIDDEN), jnp.float32),
        'b2': jnp.zeros((1, HIDDEN), jnp.float32),
        'w3': 0.1 * jax.random.normal(ks[5], (HIDDEN, 2), jnp.float32),
        'b3': jnp.zeros((1, 2), jnp.float32),
    }

    losses = set_criterion_forward(h, pred_logits, pred_nodes, tgt_nodes, tgt_edges, params)
    for v in losses.values():
        jax.block_until_ready(v)
    assert np.isfinite(float(losses['total']))
    print("KERNEL_OK")
</pallas_src>

<mosaic_0001>
module attributes {stable_mosaic.version = 11 : i64} {
  func.func @_fused_criterion_kernel(%arg0: memref<4x8xf32, #tpu.memory_space<vmem>>, %arg1: memref<9x16xf32, #tpu.memory_space<vmem>>, %arg2: memref<98x160xf32, #tpu.memory_space<vmem>>, %arg3: memref<32x96xf32, #tpu.memory_space<vmem>>, %arg4: memref<32x32xf32, #tpu.memory_space<vmem>>, %arg5: memref<32x4xf32, #tpu.memory_space<vmem>>, %arg6: memref<1x8xf32, #tpu.memory_space<vmem>>) attributes {dimension_semantics = [], scalar_prefetch = 0 : i64, scratch_operands = 0 : i64, tpu.core_type = #tpu.core_type<tc>} {
    %c0 = arith.constant 0 : index
    %c0_0 = arith.constant 0 : index
    %0 = vector.load %arg0[%c0, %c0_0] : memref<4x8xf32, #tpu.memory_space<vmem>>, vector<4x8xf32>
    %1 = vector.extract_strided_slice %0 {offsets = [0, 0], sizes = [2, 8], strides = [1, 1]} : vector<4x8xf32> to vector<2x8xf32>
    %2 = vector.extract_strided_slice %0 {offsets = [2, 0], sizes = [2, 8], strides = [1, 1]} : vector<4x8xf32> to vector<2x8xf32>
    %cst = arith.constant 0.000000e+00 : f32
    %3 = vector.broadcast %cst : f32 to vector<2x8xf32>
    %4 = arith.subf %3, %1 : vector<2x8xf32>
    %cst_1 = arith.constant 0.000000e+00 : f32
    %5 = vector.broadcast %cst_1 : f32 to vector<2x8xf32>
    %6 = arith.maximumf %4, %5 : vector<2x8xf32>
    %7 = math.absf %4 : vector<2x8xf32>
    %cst_2 = arith.constant 0.000000e+00 : f32
    %8 = vector.broadcast %cst_2 : f32 to vector<2x8xf32>
    %9 = arith.subf %8, %7 : vector<2x8xf32>
    %10 = math.exp %9 : vector<2x8xf32>
    %cst_3 = arith.constant 1.000000e+00 : f32
    %11 = vector.broadcast %cst_3 : f32 to vector<2x8xf32>
    %12 = arith.addf %11, %10 : vector<2x8xf32>
    %13 = math.log %12 : vector<2x8xf32>
    %14 = arith.addf %6, %13 : vector<2x8xf32>
    %15 = arith.mulf %2, %14 : vector<2x8xf32>
    %cst_4 = arith.constant 1.000000e+00 : f32
    %16 = vector.broadcast %cst_4 : f32 to vector<2x8xf32>
    %17 = arith.subf %16, %2 : vector<2x8xf32>
    %cst_5 = arith.constant 0.000000e+00 : f32
    %18 = vector.broadcast %cst_5 : f32 to vector<2x8xf32>
    %19 = arith.maximumf %1, %18 : vector<2x8xf32>
    %20 = math.absf %1 : vector<2x8xf32>
    %cst_6 = arith.constant 0.000000e+00 : f32
    %21 = vector.broadcast %cst_6 : f32 to vector<2x8xf32>
    %22 = arith.subf %21, %20 : vector<2x8xf32>
    %23 = math.exp %22 : vector<2x8xf32>
    %cst_7 = arith.constant 1.000000e+00 : f32
    %24 = vector.broadcast %cst_7 : f32 to vector<2x8xf32>
    %25 = arith.addf %24, %23 : vector<2x8xf32>
    %26 = math.log %25 : vector<2x8xf32>
    %27 = arith.addf %19, %26 : vector<2x8xf32>
    %28 = arith.mulf %17, %27 : vector<2x8xf32>
    %29 = arith.addf %15, %28 : vector<2x8xf32>
    %cst_8 = arith.constant 6.000000e-01 : f32
    %30 = vector.broadcast %cst_8 : f32 to vector<2x8xf32>
    %31 = arith.mulf %30, %2 : vector<2x8xf32>
    %cst_9 = arith.constant 2.000000e-01 : f32
    %32 = vector.broadcast %cst_9 : f32 to vector<2x8xf32>
    %33 = arith.addf %32, %31 : vector<2x8xf32>
    %34 = arith.mulf %33, %29 : vector<2x8xf32>
    %cst_10 = arith.constant dense<0.000000e+00> : vector<2xf32>
    %35 = vector.multi_reduction <add>, %34, %cst_10 [1] : vector<2x8xf32> to vector<2xf32>
    %36 = vector.shape_cast %35 : vector<2xf32> to vector<2x1xf32>
    %cst_11 = arith.constant dense<0.000000e+00> : vector<1xf32>
    %37 = vector.multi_reduction <add>, %36, %cst_11 [0] : vector<2x1xf32> to vector<1xf32>
    %38 = vector.shape_cast %37 : vector<1xf32> to vector<1x1xf32>
    %cst_12 = arith.constant dense<0.000000e+00> : vector<2xf32>
    %39 = vector.multi_reduction <add>, %33, %cst_12 [1] : vector<2x8xf32> to vector<2xf32>
    %40 = vector.shape_cast %39 : vector<2xf32> to vector<2x1xf32>
    %cst_13 = arith.constant dense<0.000000e+00> : vector<1xf32>
    %41 = vector.multi_reduction <add>, %40, %cst_13 [0] : vector<2x1xf32> to vector<1xf32>
    %42 = vector.shape_cast %41 : vector<1xf32> to vector<1x1xf32>
    %43 = arith.divf %38, %42 : vector<1x1xf32>
    %cst_14 = arith.constant 0.000000e+00 : f32
    %44 = vector.broadcast %cst_14 : f32 to vector<2x8xf32>
    %45 = arith.cmpf ogt, %1, %44 : vector<2x8xf32>
    %46 = arith.extui %45 : vector<2x8xi1> to vector<2x8xi32>
    %47 = arith.sitofp %46 : vector<2x8xi32> to vector<2x8xf32>
    %cst_15 = arith.constant dense<0.000000e+00> : vector<2xf32>
    %48 = vector.multi_reduction <add>, %47, %cst_15 [1] : vector<2x8xf32> to vector<2xf32>
    %49 = vector.shape_cast %48 : vector<2xf32> to vector<2x1xf32>
    %cst_16 = arith.constant dense<0.000000e+00> : vector<2xf32>
    %50 = vector.multi_reduction <add>, %2, %cst_16 [1] : vector<2x8xf32> to vector<2xf32>
    %51 = vector.shape_cast %50 : vector<2xf32> to vector<2x1xf32>
    %52 = arith.subf %49, %51 : vector<2x1xf32>
    %53 = math.absf %52 : vector<2x1xf32>
    %cst_17 = arith.constant dense<0.000000e+00> : vector<1xf32>
    %54 = vector.multi_reduction <add>, %53, %cst_17 [0] : vector<2x1xf32> to vector<1xf32>
    %55 = vector.shape_cast %54 : vector<1xf32> to vector<1x1xf32>
    %cst_18 = arith.constant 1.600000e+01 : f32
    %56 = vector.broadcast %cst_18 : f32 to vector<1x1xf32>
    %57 = arith.divf %55, %56 : vector<1x1xf32>
    %c0_19 = arith.constant 0 : index
    %c0_20 = arith.constant 0 : index
    %58 = vector.load %arg1[%c0_19, %c0_20] : memref<9x16xf32, #tpu.memory_space<vmem>>, vector<9x16xf32>
    %59 = vector.extract_strided_slice %58 {offsets = [0, 0], sizes = [1, 16], strides = [1, 1]} : vector<9x16xf32> to vector<1x16xf32>
    %60 = vector.extract_strided_slice %58 {offsets = [1, 0], sizes = [1, 16], strides = [1, 1]} : vector<9x16xf32> to vector<1x16xf32>
    %61 = vector.extract_strided_slice %58 {offsets = [2, 0], sizes = [1, 16], strides = [1, 1]} : vector<9x16xf32> to vector<1x16xf32>
    %62 = vector.extract_strided_slice %58 {offsets = [3, 0], sizes = [1, 16], strides = [1, 1]} : vector<9x16xf32> to vector<1x16xf32>
    %63 = vector.extract_strided_slice %58 {offsets = [4, 0], sizes = [1, 16], strides = [1, 1]} : vector<9x16xf32> to vector<1x16xf32>
    %64 = vector.extract_strided_slice %58 {offsets = [5, 0], sizes = [1, 16], strides = [1, 1]} : vector<9x16xf32> to vector<1x16xf32>
    %65 = vector.extract_strided_slice %58 {offsets = [6, 0], sizes = [1, 16], strides = [1, 1]} : vector<9x16xf32> to vector<1x16xf32>
    %66 = vector.extract_strided_slice %58 {offsets = [7, 0], sizes = [1, 16], strides = [1, 1]} : vector<9x16xf32> to vector<1x16xf32>
    %67 = vector.extract_strided_slice %58 {offsets = [8, 0], sizes = [1, 16], strides = [1, 1]} : vector<9x16xf32> to vector<1x16xf32>
    %cst_21 = arith.constant dense<0.000000e+00> : vector<1xf32>
    %68 = vector.multi_reduction <add>, %67, %cst_21 [1] : vector<1x16xf32> to vector<1xf32>
    %69 = vector.shape_cast %68 : vector<1xf32> to vector<1x1xf32>
    %cst_22 = arith.constant dense<0.000000e+00> : vector<1xf32>
    %70 = vector.multi_reduction <add>, %69, %cst_22 [0] : vector<1x1xf32> to vector<1xf32>
    %71 = vector.shape_cast %70 : vector<1xf32> to vector<1x1xf32>
    %cst_23 = arith.constant 1.000000e+00 : f32
    %72 = vector.broadcast %cst_23 : f32 to vector<1x1xf32>
    %73 = arith.maximumf %71, %72 : vector<1x1xf32>
    %74 = arith.subf %59, %63 : vector<1x16xf32>
    %75 = math.absf %74 : vector<1x16xf32>
    %76 = arith.subf %60, %64 : vector<1x16xf32>
    %77 = math.absf %76 : vector<1x16xf32>
    %78 = arith.addf %75, %77 : vector<1x16xf32>
    %79 = arith.mulf %67, %78 : vector<1x16xf32>
    %cst_24 = arith.constant dense<0.000000e+00> : vector<1xf32>
    %80 = vector.multi_reduction <add>, %79, %cst_24 [1] : vector<1x16xf32> to vector<1xf32>
    %81 = vector.shape_cast %80 : vector<1xf32> to vector<1x1xf32>
    %cst_25 = arith.constant dense<0.000000e+00> : vector<1xf32>
    %82 = vector.multi_reduction <add>, %81, %cst_25 [0] : vector<1x1xf32> to vector<1xf32>
    %83 = vector.shape_cast %82 : vector<1xf32> to vector<1x1xf32>
    %84 = arith.divf %83, %73 : vector<1x1xf32>
    %cst_26 = arith.constant 5.000000e-01 : f32
    %85 = vector.broadcast %cst_26 : f32 to vector<1x16xf32>
    %86 = arith.mulf %85, %61 : vector<1x16xf32>
    %87 = arith.subf %59, %86 : vector<1x16xf32>
    %cst_27 = arith.constant 5.000000e-01 : f32
    %88 = vector.broadcast %cst_27 : f32 to vector<1x16xf32>
    %89 = arith.mulf %88, %62 : vector<1x16xf32>
    %90 = arith.subf %60, %89 : vector<1x16xf32>
    %cst_28 = arith.constant 5.000000e-01 : f32
    %91 = vector.broadcast %cst_28 : f32 to vector<1x16xf32>
    %92 = arith.mulf %91, %61 : vector<1x16xf32>
    %93 = arith.addf %59, %92 : vector<1x16xf32>
    %cst_29 = arith.constant 5.000000e-01 : f32
    %94 = vector.broadcast %cst_29 : f32 to vector<1x16xf32>
    %95 = arith.mulf %94, %62 : vector<1x16xf32>
    %96 = arith.addf %60, %95 : vector<1x16xf32>
    %cst_30 = arith.constant 5.000000e-01 : f32
    %97 = vector.broadcast %cst_30 : f32 to vector<1x16xf32>
    %98 = arith.mulf %97, %65 : vector<1x16xf32>
    %99 = arith.subf %63, %98 : vector<1x16xf32>
    %cst_31 = arith.constant 5.000000e-01 : f32
    %100 = vector.broadcast %cst_31 : f32 to vector<1x16xf32>
    %101 = arith.mulf %100, %66 : vector<1x16xf32>
    %102 = arith.subf %64, %101 : vector<1x16xf32>
    %cst_32 = arith.constant 5.000000e-01 : f32
    %103 = vector.broadcast %cst_32 : f32 to vector<1x16xf32>
    %104 = arith.mulf %103, %65 : vector<1x16xf32>
    %105 = arith.addf %63, %104 : vector<1x16xf32>
    %cst_33 = arith.constant 5.000000e-01 : f32
    %106 = vector.broadcast %cst_33 : f32 to vector<1x16xf32>
    %107 = arith.mulf %106, %66 : vector<1x16xf32>
    %108 = arith.addf %64, %107 : vector<1x16xf32>
    %109 = arith.subf %93, %87 : vector<1x16xf32>
    %110 = arith.subf %96, %90 : vector<1x16xf32>
    %111 = arith.mulf %109, %110 : vector<1x16xf32>
    %112 = arith.subf %105, %99 : vector<1x16xf32>
    %113 = arith.subf %108, %102 : vector<1x16xf32>
    %114 = arith.mulf %112, %113 : vector<1x16xf32>
    %115 = arith.minimumf %93, %105 : vector<1x16xf32>
    %116 = arith.maximumf %87, %99 : vector<1x16xf32>
    %117 = arith.subf %115, %116 : vector<1x16xf32>
    %cst_34 = arith.constant 0.000000e+00 : f32
    %118 = vector.broadcast %cst_34 : f32 to vector<1x16xf32>
    %119 = arith.maximumf %117, %118 : vector<1x16xf32>
    %120 = arith.minimumf %96, %108 : vector<1x16xf32>
    %121 = arith.maximumf %90, %102 : vector<1x16xf32>
    %122 = arith.subf %120, %121 : vector<1x16xf32>
    %cst_35 = arith.constant 0.000000e+00 : f32
    %123 = vector.broadcast %cst_35 : f32 to vector<1x16xf32>
    %124 = arith.maximumf %122, %123 : vector<1x16xf32>
    %125 = arith.mulf %119, %124 : vector<1x16xf32>
    %126 = arith.addf %111, %114 : vector<1x16xf32>
    %127 = arith.subf %126, %125 : vector<1x16xf32>
    %cst_36 = arith.constant 9.99999996E-13 : f32
    %128 = vector.broadcast %cst_36 : f32 to vector<1x16xf32>
    %129 = arith.maximumf %127, %128 : vector<1x16xf32>
    %130 = arith.divf %125, %129 : vector<1x16xf32>
    %131 = arith.maximumf %93, %105 : vector<1x16xf32>
    %132 = arith.minimumf %87, %99 : vector<1x16xf32>
    %133 = arith.subf %131, %132 : vector<1x16xf32>
    %134 = arith.maximumf %96, %108 : vector<1x16xf32>
    %135 = arith.minimumf %90, %102 : vector<1x16xf32>
    %136 = arith.subf %134, %135 : vector<1x16xf32>
    %137 = arith.mulf %133, %136 : vector<1x16xf32>
    %138 = arith.subf %137, %127 : vector<1x16xf32>
    %cst_37 = arith.constant 9.99999996E-13 : f32
    %139 = vector.broadcast %cst_37 : f32 to vector<1x16xf32>
    %140 = arith.maximumf %137, %139 : vector<1x16xf32>
    %141 = arith.divf %138, %140 : vector<1x16xf32>
    %142 = arith.subf %130, %141 : vector<1x16xf32>
    %cst_38 = arith.constant 1.000000e+00 : f32
    %143 = vector.broadcast %cst_38 : f32 to vector<1x16xf32>
    %144 = arith.subf %143, %142 : vector<1x16xf32>
    %145 = arith.mulf %67, %144 : vector<1x16xf32>
    %cst_39 = arith.constant dense<0.000000e+00> : vector<1xf32>
    %146 = vector.multi_reduction <add>, %145, %cst_39 [1] : vector<1x16xf32> to vector<1xf32>
    %147 = vector.shape_cast %146 : vector<1xf32> to vector<1x1xf32>
    %cst_40 = arith.constant dense<0.000000e+00> : vector<1xf32>
    %148 = vector.multi_reduction <add>, %147, %cst_40 [0] : vector<1x1xf32> to vector<1xf32>
    %149 = vector.shape_cast %148 : vector<1xf32> to vector<1x1xf32>
    %150 = arith.divf %149, %73 : vector<1x1xf32>
    %c0_41 = arith.constant 0 : index
    %c0_42 = arith.constant 0 : index
    %151 = vector.load %arg2[%c0_41, %c0_42] : memref<98x160xf32, #tpu.memory_space<vmem>>, vector<96x160xf32>
    %c96 = arith.constant 96 : index
    %c0_43 = arith.constant 0 : index
    %152 = vector.load %arg2[%c96, %c0_43] : memref<98x160xf32, #tpu.memory_space<vmem>>, vector<1x160xf32>
    %c97 = arith.constant 97 : index
    %c0_44 = arith.constant 0 : index
    %153 = vector.load %arg2[%c97, %c0_44] : memref<98x160xf32, #tpu.memory_space<vmem>>, vector<1x160xf32>
    %c0_45 = arith.constant 0 : index
    %c0_46 = arith.constant 0 : index
    %154 = vector.load %arg5[%c0_45, %c0_46] : memref<32x4xf32, #tpu.memory_space<vmem>>, vector<32x4xf32>
    %155 = vector.extract_strided_slice %154 {offsets = [0, 0], sizes = [32, 1], strides = [1, 1]} : vector<32x4xf32> to vector<32x1xf32>
    %156 = vector.extract_strided_slice %154 {offsets = [0, 1], sizes = [32, 1], strides = [1, 1]} : vector<32x4xf32> to vector<32x1xf32>
    %157 = vector.extract_strided_slice %154 {offsets = [0, 2], sizes = [32, 1], strides = [1, 1]} : vector<32x4xf32> to vector<32x1xf32>
    %158 = vector.extract_strided_slice %154 {offsets = [0, 3], sizes = [1, 1], strides = [1, 1]} : vector<32x4xf32> to vector<1x1xf32>
    %c0_47 = arith.constant 0 : index
    %c0_48 = arith.constant 0 : index
    %159 = vector.load %arg3[%c0_47, %c0_48] : memref<32x96xf32, #tpu.memory_space<vmem>>, vector<32x96xf32>
    %cst_49 = arith.constant dense<0.000000e+00> : vector<32x160xf32>
    %160 = tpu.matmul %159, %151, %cst_49 {dimension_numbers = #tpu.dot_dimension_numbers<[1], [0], [0], [1], [0, 0, 1, 1], [], []>} : vector<32x96xf32>, vector<96x160xf32>, vector<32x160xf32> -> vector<32x160xf32>
    %161 = vector.broadcast %155 : vector<32x1xf32> to vector<32x160xf32>
    %162 = arith.addf %160, %161 : vector<32x160xf32>
    %cst_50 = arith.constant 0.000000e+00 : f32
    %163 = vector.broadcast %cst_50 : f32 to vector<32x160xf32>
    %164 = arith.maximumf %162, %163 : vector<32x160xf32>
    %c0_51 = arith.constant 0 : index
    %c0_52 = arith.constant 0 : index
    %165 = vector.load %arg4[%c0_51, %c0_52] : memref<32x32xf32, #tpu.memory_space<vmem>>, vector<32x32xf32>
    %cst_53 = arith.constant dense<0.000000e+00> : vector<32x160xf32>
    %166 = tpu.matmul %165, %164, %cst_53 {dimension_numbers = #tpu.dot_dimension_numbers<[1], [0], [0], [1], [0, 0, 1, 1], [], []>} : vector<32x32xf32>, vector<32x160xf32>, vector<32x160xf32> -> vector<32x160xf32>
    %167 = vector.broadcast %156 : vector<32x1xf32> to vector<32x160xf32>
    %168 = arith.addf %166, %167 : vector<32x160xf32>
    %cst_54 = arith.constant 0.000000e+00 : f32
    %169 = vector.broadcast %cst_54 : f32 to vector<32x160xf32>
    %170 = arith.maximumf %168, %169 : vector<32x160xf32>
    %171 = vector.broadcast %157 : vector<32x1xf32> to vector<32x160xf32>
    %172 = arith.mulf %171, %170 : vector<32x160xf32>
    %cst_55 = arith.constant dense<0.000000e+00> : vector<160xf32>
    %173 = vector.multi_reduction <add>, %172, %cst_55 [0] : vector<32x160xf32> to vector<160xf32>
    %174 = vector.shape_cast %173 : vector<160xf32> to vector<1x160xf32>
    %175 = vector.broadcast %158 : vector<1x1xf32> to vector<1x160xf32>
    %176 = arith.addf %174, %175 : vector<1x160xf32>
    %cst_56 = arith.constant 0.000000e+00 : f32
    %177 = vector.broadcast %cst_56 : f32 to vector<1x160xf32>
    %178 = arith.subf %177, %176 : vector<1x160xf32>
    %cst_57 = arith.constant 0.000000e+00 : f32
    %179 = vector.broadcast %cst_57 : f32 to vector<1x160xf32>
    %180 = arith.maximumf %178, %179 : vector<1x160xf32>
    %181 = math.absf %178 : vector<1x160xf32>
    %cst_58 = arith.constant 0.000000e+00 : f32
    %182 = vector.broadcast %cst_58 : f32 to vector<1x160xf32>
    %183 = arith.subf %182, %181 : vector<1x160xf32>
    %184 = math.exp %183 : vector<1x160xf32>
    %cst_59 = arith.constant 1.000000e+00 : f32
    %185 = vector.broadcast %cst_59 : f32 to vector<1x160xf32>
    %186 = arith.addf %185, %184 : vector<1x160xf32>
    %187 = math.log %186 : vector<1x160xf32>
    %188 = arith.addf %180, %187 : vector<1x160xf32>
    %189 = arith.mulf %152, %188 : vector<1x160xf32>
    %cst_60 = arith.constant 1.000000e+00 : f32
    %190 = vector.broadcast %cst_60 : f32 to vector<1x160xf32>
    %191 = arith.subf %190, %152 : vector<1x160xf32>
    %cst_61 = arith.constant 0.000000e+00 : f32
    %192 = vector.broadcast %cst_61 : f32 to vector<1x160xf32>
    %193 = arith.maximumf %176, %192 : vector<1x160xf32>
    %194 = math.absf %176 : vector<1x160xf32>
    %cst_62 = arith.constant 0.000000e+00 : f32
    %195 = vector.broadcast %cst_62 : f32 to vector<1x160xf32>
    %196 = arith.subf %195, %194 : vector<1x160xf32>
    %197 = math.exp %196 : vector<1x160xf32>
    %cst_63 = arith.constant 1.000000e+00 : f32
    %198 = vector.broadcast %cst_63 : f32 to vector<1x160xf32>
    %199 = arith.addf %198, %197 : vector<1x160xf32>
    %200 = math.log %199 : vector<1x160xf32>
    %201 = arith.addf %193, %200 : vector<1x160xf32>
    %202 = arith.mulf %191, %201 : vector<1x160xf32>
    %203 = arith.addf %189, %202 : vector<1x160xf32>
    %204 = arith.mulf %153, %203 : vector<1x160xf32>
    %cst_64 = arith.constant dense<0.000000e+00> : vector<1xf32>
    %205 = vector.multi_reduction <add>, %204, %cst_64 [1] : vector<1x160xf32> to vector<1xf32>
    %206 = vector.shape_cast %205 : vector<1xf32> to vector<1x1xf32>
    %cst_65 = arith.constant dense<0.000000e+00> : vector<1xf32>
    %207 = vector.multi_reduction <add>, %206, %cst_65 [0] : vector<1x1xf32> to vector<1xf32>
    %208 = vector.shape_cast %207 : vector<1xf32> to vector<1x1xf32>
    %cst_66 = arith.constant dense<0.000000e+00> : vector<1xf32>
    %209 = vector.multi_reduction <add>, %153, %cst_66 [1] : vector<1x160xf32> to vector<1xf32>
    %210 = vector.shape_cast %209 : vector<1xf32> to vector<1x1xf32>
    %cst_67 = arith.constant dense<0.000000e+00> : vector<1xf32>
    %211 = vector.multi_reduction <add>, %210, %cst_67 [0] : vector<1x1xf32> to vector<1xf32>
    %212 = vector.shape_cast %211 : vector<1xf32> to vector<1x1xf32>
    %cst_68 = arith.constant 1.000000e+00 : f32
    %213 = vector.broadcast %cst_68 : f32 to vector<1x1xf32>
    %214 = arith.maximumf %212, %213 : vector<1x1xf32>
    %215 = arith.divf %208, %214 : vector<1x1xf32>
    %cst_69 = arith.constant 2.000000e+00 : f32
    %216 = vector.broadcast %cst_69 : f32 to vector<1x1xf32>
    %217 = arith.mulf %150, %216 : vector<1x1xf32>
    %cst_70 = arith.constant 0.000000e+00 : f32
    %218 = vector.broadcast %cst_70 : f32 to vector<1x1xf32>
    %219 = arith.addf %218, %217 : vector<1x1xf32>
    %cst_71 = arith.constant 3.000000e+00 : f32
    %220 = vector.broadcast %cst_71 : f32 to vector<1x1xf32>
    %221 = arith.mulf %43, %220 : vector<1x1xf32>
    %222 = arith.addf %219, %221 : vector<1x1xf32>
    %cst_72 = arith.constant 5.000000e+00 : f32
    %223 = vector.broadcast %cst_72 : f32 to vector<1x1xf32>
    %224 = arith.mulf %84, %223 : vector<1x1xf32>
    %225 = arith.addf %222, %224 : vector<1x1xf32>
    %cst_73 = arith.constant 4.000000e+00 : f32
    %226 = vector.broadcast %cst_73 : f32 to vector<1x1xf32>
    %227 = arith.mulf %215, %226 : vector<1x1xf32>
    %228 = arith.addf %225, %227 : vector<1x1xf32>
    %cst_74 = arith.constant 1.000000e+00 : f32
    %229 = vector.broadcast %cst_74 : f32 to vector<1x1xf32>
    %230 = arith.mulf %57, %229 : vector<1x1xf32>
    %231 = arith.addf %228, %230 : vector<1x1xf32>
    %232 = tpu.iota {dimensions = array<i32: 1>} : vector<1x8xi32>
    %cst_75 = arith.constant 0.000000e+00 : f32
    %233 = vector.broadcast %cst_75 : f32 to vector<1x8xf32>
    %c0_i32 = arith.constant 0 : i32
    %234 = vector.broadcast %c0_i32 : i32 to vector<1x8xi32>
    %235 = arith.cmpi eq, %232, %234 : vector<1x8xi32>
    %cst_76 = arith.constant 0.000000e+00 : f32
    %236 = vector.shape_cast %43 : vector<1x1xf32> to vector<1x1xf32>
    %237 = vector.broadcast %236 : vector<1x1xf32> to vector<1x8xf32>
    %238 = vector.broadcast %cst_76 : f32 to vector<1x8xf32>
    %239 = arith.select %235, %237, %238 : vector<1x8xi1>, vector<1x8xf32>
    %240 = arith.addf %233, %239 : vector<1x8xf32>
    %c1_i32 = arith.constant 1 : i32
    %241 = vector.broadcast %c1_i32 : i32 to vector<1x8xi32>
    %242 = arith.cmpi eq, %232, %241 : vector<1x8xi32>
    %cst_77 = arith.constant 0.000000e+00 : f32
    %243 = vector.shape_cast %84 : vector<1x1xf32> to vector<1x1xf32>
    %244 = vector.broadcast %243 : vector<1x1xf32> to vector<1x8xf32>
    %245 = vector.broadcast %cst_77 : f32 to vector<1x8xf32>
    %246 = arith.select %242, %244, %245 : vector<1x8xi1>, vector<1x8xf32>
    %247 = arith.addf %240, %246 : vector<1x8xf32>
    %c2_i32 = arith.constant 2 : i32
    %248 = vector.broadcast %c2_i32 : i32 to vector<1x8xi32>
    %249 = arith.cmpi eq, %232, %248 : vector<1x8xi32>
    %cst_78 = arith.constant 0.000000e+00 : f32
    %250 = vector.shape_cast %150 : vector<1x1xf32> to vector<1x1xf32>
    %251 = vector.broadcast %250 : vector<1x1xf32> to vector<1x8xf32>
    %252 = vector.broadcast %cst_78 : f32 to vector<1x8xf32>
    %253 = arith.select %249, %251, %252 : vector<1x8xi1>, vector<1x8xf32>
    %254 = arith.addf %247, %253 : vector<1x8xf32>
    %c3_i32 = arith.constant 3 : i32
    %255 = vector.broadcast %c3_i32 : i32 to vector<1x8xi32>
    %256 = arith.cmpi eq, %232, %255 : vector<1x8xi32>
    %cst_79 = arith.constant 0.000000e+00 : f32
    %257 = vector.shape_cast %215 : vector<1x1xf32> to vector<1x1xf32>
    %258 = vector.broadcast %257 : vector<1x1xf32> to vector<1x8xf32>
    %259 = vector.broadcast %cst_79 : f32 to vector<1x8xf32>
    %260 = arith.select %256, %258, %259 : vector<1x8xi1>, vector<1x8xf32>
    %261 = arith.addf %254, %260 : vector<1x8xf32>
    %c4_i32 = arith.constant 4 : i32
    %262 = vector.broadcast %c4_i32 : i32 to vector<1x8xi32>
    %263 = arith.cmpi eq, %232, %262 : vector<1x8xi32>
    %cst_80 = arith.constant 0.000000e+00 : f32
    %264 = vector.shape_cast %57 : vector<1x1xf32> to vector<1x1xf32>
    %265 = vector.broadcast %264 : vector<1x1xf32> to vector<1x8xf32>
    %266 = vector.broadcast %cst_80 : f32 to vector<1x8xf32>
    %267 = arith.select %263, %265, %266 : vector<1x8xi1>, vector<1x8xf32>
    %268 = arith.addf %261, %267 : vector<1x8xf32>
    %c5_i32 = arith.constant 5 : i32
    %269 = vector.broadcast %c5_i32 : i32 to vector<1x8xi32>
    %270 = arith.cmpi eq, %232, %269 : vector<1x8xi32>
    %cst_81 = arith.constant 0.000000e+00 : f32
    %271 = vector.shape_cast %231 : vector<1x1xf32> to vector<1x1xf32>
    %272 = vector.broadcast %271 : vector<1x1xf32> to vector<1x8xf32>
    %273 = vector.broadcast %cst_81 : f32 to vector<1x8xf32>
    %274 = arith.select %270, %272, %273 : vector<1x8xi1>, vector<1x8xf32>
    %275 = arith.addf %268, %274 : vector<1x8xf32>
    %c0_82 = arith.constant 0 : index
    %c0_83 = arith.constant 0 : index
    %276 = vector.load %arg6[%c0_82, %c0_83] : memref<1x8xf32, #tpu.memory_space<vmem>>, vector<1x8xf32>
    tpu.vector_store %arg6[%c0_82, %c0_83], %275 {strides = array<i32>} : memref<1x8xf32, #tpu.memory_space<vmem>>, vector<1x8xf32>,
    return
  }
}

</mosaic_0001>

<bundles_post_ra>
// kernel: _device_losses.1
= control target key start
LH: loop header
LB: loop body
LE: loop exit
PB: predicated region body
PF: predicated region fallthrough
CT: control target
= control target key end

     0   :  { %v826_v7 = vmov 0.0   ;;  %v827_v8 = vmov 0   ;;  %s1130_s0 = inlined_call_operand.vmem [shape: f32[4,8], index: 0, kind: input, shape index: {}]   ;;  %s1131_s1 = inlined_call_operand.vmem [shape: f32[9,16], index: 1, kind: input, shape index: {}]   ;;  %s1132_s2 = inlined_call_operand.vmem [shape: f32[98,160], index: 2, kind: input, shape index: {}]   ;;  %s1133_s3 = inlined_call_operand.vmem [shape: f32[32,96], index: 3, kind: input, shape index: {}]   ;;  %s1134_s4 = inlined_call_operand.vmem [shape: f32[32,32], index: 4, kind: input, shape index: {}]   ;;  %s1135_s5 = inlined_call_operand.vmem [shape: f32[32,4], index: 5, kind: input, shape index: {}]   ;;  %s1136_s6 = inlined_call_operand.hbm [shape: f32[1,8], index: 6, kind: output, shape index: {}]  }
   0x1   :  { %v189_v0 = vld [vmem:[%s1132_s2 + $0x8] sm:$0xff]  ;;  %v191_v1 = vld [vmem:[%s1132_s2 + $0x18] sm:$0xff]  ;;  %v188_v2 = vld [vmem:[%s1132_s2] sm:$0xff]  ;;  %321 = vmatprep.mubr.f32.mxu0 %v826_v7  ;;  %759 = vset.pattern.permute.xlu0 %v827_v8 }
   0x2   :  { %v720_v3 = vpack.c.bf16 %v191_v1, %v189_v0  ;;  %v190_v4 = vld [vmem:[%s1132_s2 + $0x10] sm:$0xff]  ;;  %v193_v5 = vld [vmem:[%s1132_s2 + $0x28] sm:$0xff]  ;;  %v195_v6 = vld [vmem:[%s1132_s2 + $0x38] sm:$0xff]  ;;  %760 = vset.pattern.permute.xlu1 %v827_v8  ;;  %451 = vmatprep.mubr.f32.mxu1 %v826_v7 }
   0x3   :  { %v722_v9 = vpack.c.bf16 %v190_v4, %v188_v2  ;;  %v724_v10 = vpack.c.bf16 %v195_v6, %v193_v5  ;;  %v192_v11 = vld [vmem:[%s1132_s2 + $0x20] sm:$0xff]  ;;  %v194_v12 = vld [vmem:[%s1132_s2 + $0x30] sm:$0xff]  ;;  %v197_v13 = vld [vmem:[%s1132_s2 + $0x48] sm:$0xff] }
   0x4   :  { %721 = vmatprep.subr.bf16.mxu0 %v720_v3  ;;  %v199_v14 = vld [vmem:[%s1132_s2 + $0x58] sm:$0xff]  ;;  %v726_v15 = vpack.c.bf16 %v194_v12, %v192_v11  ;;  %v196_v17 = vld [vmem:[%s1132_s2 + $0x40] sm:$0xff]  ;;  %v198_v18 = vld [vmem:[%s1132_s2 + $0x50] sm:$0xff] }
   0x5   :  { %723 = vmatpush1.bf16.msra.mxu0 %v722_v9  ;;  %v728_v16 = vpack.c.bf16 %v199_v14, %v197_v13  ;;  %v201_v19 = vld [vmem:[%s1132_s2 + $0x68] sm:$0xff]  ;;  %v203_v20 = vld [vmem:[%s1132_s2 + $0x78] sm:$0xff]  ;;  %v730_v21 = vpack.c.bf16 %v198_v18, %v196_v17  ;;  %v200_v22 = vld [vmem:[%s1132_s2 + $0x60] sm:$0xff] }
   0x6   :  { %725 = vmatprep.subr.bf16.mxu0 %v724_v10  ;;  %v732_v23 = vpack.c.bf16 %v203_v20, %v201_v19  ;;  %v202_v24 = vld [vmem:[%s1132_s2 + $0x70] sm:$0xff]  ;;  %v205_v25 = vld [vmem:[%s1132_s2 + $0x88] sm:$0xff]  ;;  %v926_v26 = vld [vmem:[%s1135_s5] sm:$0xff] }
   0x7   :  { %v207_v27 = vld [vmem:[%s1132_s2 + $0x98] sm:$0xff]  ;;  %226 = vperm.xlu0 %759, %v926_v26   ;;  %v218_v28 = vld [vmem:[%s1135_s5 + $0x10] sm:$0xff] }
   0x9   :  { %727 = vmatpush1.bf16.msra.mxu0 %v726_v15 }
   0xa   :  { %729 = vmatprep.subr.bf16.mxu0 %v728_v16 }
   0xb   :  { %11 = vsyncpa [#allocation3], 0  ;;  %v217_v29 = vld [vmem:[%s1135_s5 + $0x8] sm:$0xff]  ;;  %236 = vperm.xlu1 %760, %v218_v28   ;;  %v734_v30 = vpack.c.bf16 %v202_v24, %v200_v22  ;;  %v219_v31 = vld [vmem:[%s1135_s5 + $0x18] sm:$0xff]  ;;  %v736_v32 = vpack.c.bf16 %v207_v27, %v205_v25  ;;  %vm244_vm0 = vcmask 785408   ;;  %v828_v47 = vmov 1  }
   0xc   :  { %v204_v33 = vld [vmem:[%s1132_s2 + $0x80] sm:$0xff]  ;;  %v206_v34 = vld [vmem:[%s1132_s2 + $0x90] sm:$0xff]  ;;  %v209_v35 = vld [vmem:[%s1132_s2 + $0xa8] sm:$0xff]  ;;  %231 = vperm.xlu0 %759, %v217_v29   ;;  %v829_v55 = vmov 2   ;;  %v830_v56 = vmov 3   ;;  %vm57_vm1 = vcmask 60418  }
   0xd   :  { %731 = vmatpush1.bf16.msra.mxu0 %v730_v21  ;;  %v211_v36 = vld [vmem:[%s1132_s2 + $0xb8] sm:$0xff]  ;;  %v738_v37 = vpack.c.bf16 %v206_v34, %v204_v33  ;;  %v208_v39 = vld [vmem:[%s1132_s2 + $0xa0] sm:$0xff]  ;;  %v210_v40 = vld [vmem:[%s1132_s2 + $0xb0] sm:$0xff]  ;;  %vm114_vm2 = vcmask 122880   ;;  %vm90_vm4 = vcmask 58368   ;;  %vm374_vm5 = vcmask 261120  }
   0xe   :  { %733 = vmatprep.subr.bf16.mxu0 %v732_v23  ;;  %v740_v38 = vpack.c.bf16 %v211_v36, %v209_v35  ;;  %v742_v41 = vpack.c.bf16 %v210_v40, %v208_v39  ;;  %v220_v42 = vld [vmem:[%s1133_s3] sm:$0xff]  ;;  %v221_v43 = vld [vmem:[%s1133_s3 + $0x8] sm:$0xff]  ;;  %v222_v44 = vld [vmem:[%s1133_s3 + $0x10] sm:$0xff]  ;;  %vm626_vm6 = vcmask 1040384   ;;  %vm628_vm7 = vcmask 253952  }
   0xf   :  { %241 = vperm.xlu1 %760, %v219_v31   ;;  %v223_v45 = vld [vmem:[%s1133_s3 + $0x18] sm:$0xff]  ;;  %v977_v46 = vld [vmem:[%s1130_s0] sm:$0xf]  ;;  %v994_v18 = vld [vmem:[%s1131_s1 + $0x8] sm:$0x1]  ;;  %vm64_vm8 = vcmask 1041408  }
  0x10   :  { %761 = vset.pattern.permute.xlu0 %v828_v47  ;;  %v25_v48 = vsub.f32 0.0, %v977_v46  ;;  %v41_v49 = vand.u32 2147483647, %v977_v46  ;;  %v40_v61 = vmax.f32 %v977_v46, 0.0  ;;  %v39_v3 = vsub.f32 1.0, %v977_v46 }
  0x11   :  { %735 = vmatpush1.bf16.msra.mxu0 %v734_v30  ;;  %359 = vperm.xlu0 %761, %v926_v26   ;;  %v54_v5 = vmul.f32 0.6, %v977_v46  ;;  %v94_v16 = vsel %vm57_vm1, %v977_v46, 0.0  ;;  %vm87_vm3 = vcmp.gt.f32.partialorder %v977_v46, 0.0  ;;  %v115_v19 = vsel %vm114_vm2, %v994_v18, 0.0 }
  0x12   :  { %737 = vmatprep.subr.bf16.mxu0 %v736_v32  ;;  %v27_v50 = vand.u32 2147483647, %v25_v48  ;;  %v42_v51 = vsub.f32 0.0, %v41_v49  ;;  %v26_v63 = vmax.f32 %v25_v48, 0.0  ;;  %v709_v20 = vsel %vm87_vm3, 1.0, %v826_v7 }
  0x13   :  { %762 = vset.pattern.permute.xlu1 %v828_v47  ;;  %v55_v12 = vadd.f32 0.2, %v54_v5  ;;  %v91_v21 = vsel %vm90_vm4, %v709_v20, 0.0  ;;  %vm102_vm9 = vcmask 1024  }
  0x14   :  { %363 = vperm.xlu1 %762, %v217_v29   ;;  %v28_v52 = vsub.f32 0.0, %v27_v50  ;;  %v43_v53 = vmul.f32 1.442695, %v42_v51 }
  0x15   :  { %739 = vmatpush1.bf16.msra.mxu0 %v738_v37  ;;  %371 = vperm.xlu0 %761, %v219_v31   ;;  %v72_v17 = vsel %vm57_vm1, %v55_v12, 0.0 }
  0x16   :  { %741 = vmatprep.subr.bf16.mxu0 %v740_v38  ;;  %v29_v54 = vmul.f32 1.442695, %v28_v52  ;;  %768 = vpow2.f32 %v43_v53 }
  0x18   :  { %367 = vperm.xlu1 %762, %v218_v28   ;;  %770 = vpow2.f32 %v29_v54  ;;  %v354_v54 = vld [vmem:[%s1134_s4] sm:$0xff] }
  0x19   :  { %743 = vmatpush1.bf16.msra.mxu0 %v742_v41  ;;  %764 = vset.pattern.permute.xlu0 %v829_v55 }
  0x1a   :  { %489 = vperm.xlu0 %764, %v217_v29  }
  0x1c   :  { %712 = vmatmul.mubr.msk.f32.vlgmr.msra.gmra.mrb[0].mxu0 %vm244_vm0, %v220_v42  ;;  %763 = vset.pattern.permute.xlu1 %v829_v55  ;;  %v355_v55 = vld [vmem:[%s1134_s4 + $0x8] sm:$0xff] }
  0x1d   :  { %327 = vmatprep.mubr.f32.mxu0 %v826_v7  ;;  %485 = vperm.xlu1 %763, %v926_v26  }
  0x1e   :  { %765 = vset.pattern.permute.xlu0 %v830_v56  ;;  %v356_v56 = vld [vmem:[%s1134_s4 + $0x10] sm:$0xff] }
  0x1f   :  { %531 = vperm.xlu0 %765, %v926_v26  }
  0x20   :  { %713 = vmatmul.mubr.msk.f32.gmra.mrb[2].mxu0 %vm244_vm0, %v221_v43  ;;  %v769_v57 = vpop.eup %768 }
  0x21   :  { %333 = vmatprep.mubr.f32.mxu0 %v826_v7  ;;  %493 = vperm.xlu1 %763, %v218_v28   ;;  %v45_v59 = vadd.f32 1.0, %v769_v57  ;;  %v357_v57 = vld [vmem:[%s1134_s4 + $0x18] sm:$0xff] }
  0x22   :  { %v771_v58 = vpop.eup %770 }
  0x23   :  { %v31_v60 = vadd.f32 1.0, %v771_v58  ;;  %766 = vset.pattern.permute.xlu0 %v827_v8  ;;  %772 = vlog2.f32 %v45_v59  ;;  %v112_v58 = vld [vmem:[%s1131_s1] sm:$0xff] }
  0x24   :  { %714 = vmatmul.mubr.msk.f32.gmra.mrb[4].mxu0 %vm244_vm0, %v222_v44  ;;  %v136_v59 = vmul.f32 0.5, %v112_v58 }
  0x25   :  { %339 = vmatprep.mubr.f32.mxu0 %v826_v7  ;;  %497 = vperm.xlu1 %763, %v219_v31   ;;  %774 = vlog2.f32 %v31_v60 }
  0x26   :  { %v138_v60 = vrot.slane %v136_v59, 2 }
  0x28   :  { %715 = vmatmul.mubr.msk.f32.gmra.mrb[6].mxu0 %vm244_vm0, %v223_v45  ;;  %vm693_vm0 = vcmask 57344  }
  0x29   :  { %767 = vset.pattern.permute.xlu1 %v827_v8 }
  0x2d   :  { %v773_v62 = vpop.eup %772 }
  0x2e   :  { %v47_v1 = vmul.f32 0.6931472, %v773_v62  ;;  %v141_v62 = vadd.f32 %v138_v60, %v112_v58 }
  0x2f   :  { %v775_v0 = vpop.eup %774 }
  0x30   :  { %v33_v2 = vmul.f32 0.6931472, %v775_v0  ;;  %v48_v4 = vadd.f32 %v47_v1, %v40_v61  ;;  %v140_v61 = vsub.f32 %v112_v58, %v138_v60 }
  0x32   :  { %v34_v6 = vadd.f32 %v33_v2, %v26_v63  ;;  %v50_v9 = vrot.slane %v48_v4, 6  ;;  %v148_v63 = vrot.slane %v141_v62, 4  ;;  %v152_v0 = vrot.slane %v140_v61, 4 }
  0x33   :  { %v142_v2 = vsub.f32 %v141_v62, %v140_v61 }
  0x34   :  { %v36_v10 = vrot.slane %v34_v6, 6  ;;  %v52_v11 = vmul.f32 %v50_v9, %v39_v3  ;;  %v154_v3 = vmax.f32 %v140_v61, %v152_v0 }
  0x35   :  { %v144_v4 = vrot.slane %v142_v2, 1 }
  0x36   :  { %v38_v13 = vmul.f32 %v36_v10, %v977_v46  ;;  %v169_v10 = vmax.f32 %v141_v62, %v148_v63 }
  0x37   :  { %v146_v6 = vmul.f32 %v144_v4, %v142_v2 }
  0x38   :  { %v53_v8 = vadd.f32 %v52_v11, %v38_v13  ;;  %v170_v11 = vmin.f32 %v140_v61, %v152_v0 }
  0x3a   :  { %v56_v14 = vmul.f32 %v55_v12, %v53_v8  ;;  %v162_v8 = vrot.slane %v146_v6, 4 }
  0x3c   :  { %v58_v15 = vsel %vm57_vm1, %v56_v14, 0.0  ;;  %v171_v14 = vsub.f32 %v169_v10, %v170_v11 }
  0x3e   :  { %59 = vadd.xlane.f32.xlu0 %v58_v15 }
  0x42   :  { %95 = vadd.xlane.f32.xlu0 %v94_v16 }
  0x49   :  { %73 = vadd.xlane.f32.xlu1 %v72_v17  ;;  %v164_v17 = vadd.f32 %v162_v8, %v146_v6 }
  0x4d   :  { %116 = vadd.xlane.f32.xlu1 %v115_v19  ;;  %v173_v19 = vrot.slane %v171_v14, 1 }
  0x51   :  { %92 = vadd.xlane.f32.xlu1 %v91_v21  ;;  %v175_v21 = vmul.f32 %v173_v19, %v171_v14 }
  0x86   :  { %v227_v22 = vpop.permute.xlu0 %226 }
  0x8a   :  { %v237_v31 = vpop.permute.xlu1 %236 }
  0x8b   :  { %v232_v25 = vpop.permute.xlu0 %231 }
  0x8e   :  { %v242_v42 = vpop.permute.xlu1 %241 }
  0x90   :  { %v1026_v15 = vpop.permute.xlu0 %359 }
  0x93   :  { %v1022_v1 = vpop.permute.xlu1 %363 }
  0x97   :  { %v1024_v12 = vpop.permute.xlu1 %367 }
  0xef   :  { %v323_v23 = vpop.f32.mrb[0].mxu0 }
  0xf0   :  { %v325_v24 = vpop.f32.mrb[1].mxu0  ;;  %v324_v26 = vadd.f32 %v323_v23, %v227_v22 }
  0xf1   :  { %v326_v27 = vadd.f32 %v325_v24, %v227_v22  ;;  %v1028_v22 = vpop.permute.xlu1 %485  ;;  %v177_v24 = vmax.f32 %v175_v21, 1e-12 }
  0xf2   :  { %v346_v33 = vmax.f32 %v324_v26, 0.0 }
  0xf3   :  { %v329_v28 = vpop.f32.mrb[2].mxu0  ;;  %v347_v35 = vmax.f32 %v326_v27, 0.0  ;;  %v562_v27 = vlaneseq }
  0xf4   :  { %v330_v29 = vadd.f32 %v329_v28, %v232_v25  ;;  %v331_v30 = vpop.f32.mrb[3].mxu0 }
  0xf5   :  { %v332_v32 = vadd.f32 %v331_v30, %v232_v25  ;;  %v1030_v25 = vpop.permute.xlu0 %371  ;;  %v1032_v26 = vpop.permute.xlu1 %493  ;;  %v121_v30 = vrot.slane %v112_v58, 4 }
  0xf6   :  { %v348_v34 = vmax.f32 %v330_v29, 0.0  ;;  %v1037_v29 = vshrl.u32 %v562_v27, 7 }
  0xf7   :  { %v349_v36 = vmax.f32 %v332_v32, 0.0  ;;  %v335_v37 = vpop.f32.mrb[4].mxu0 }
  0xf8   :  { %v337_v38 = vpop.f32.mrb[5].mxu0  ;;  %v746_v39 = vpack.c.bf16 %v348_v34, %v346_v33  ;;  %v336_v41 = vadd.f32 %v335_v37, %v237_v31  ;;  %v622_v32 = vsub.s32 1, %v1037_v29  ;;  %v1048_v37 = vld [vmem:[%s1132_s2 + $0xc1] ss:$8 sm:$0x3] }
  0xf9   :  { %v744_v40 = vpack.c.bf16 %v349_v36, %v347_v35  ;;  %v338_v43 = vadd.f32 %v337_v38, %v237_v31  ;;  %v1034_v28 = vpop.permute.xlu0 %489  ;;  %v618_v31 = vsub.s32 0, %v1037_v29  ;;  %v1041_v35 = vpop.permute.xlu1 %497  ;;  %v123_v38 = vsub.f32 %v112_v58, %v121_v30 }
  0xfa   :  { %v350_v48 = vmax.f32 %v336_v41, 0.0  ;;  %v642_v41 = vrot.slane %v1048_v37, %v622_v32 }
  0xfb   :  { %v341_v44 = vpop.f32.mrb[6].mxu0  ;;  %745 = vmatprep.subr.bf16.mxu1 %v744_v40  ;;  %v351_v50 = vmax.f32 %v338_v43, 0.0  ;;  %v638_v40 = vrot.slane %v1048_v37, %v618_v31 }
  0xfc   :  { %v342_v45 = vadd.f32 %v341_v44, %v242_v42  ;;  %v343_v46 = vpop.f32.mrb[7].mxu0  ;;  %747 = vmatpush1.bf16.msra.mxu1 %v746_v39  ;;  %v124_v44 = vand.u32 2147483647, %v123_v38 }
  0xfd   :  { %v344_v47 = vadd.f32 %v343_v46, %v242_v42  ;;  %v1043_v36 = vpop.permute.xlu0 %531  ;;  %v646_v46 = vsel %vm628_vm7, %v642_v41, 0.0 }
  0xfe   :  { %v352_v49 = vmax.f32 %v342_v45, 0.0  ;;  %v645_v45 = vsel %vm626_vm6, %v638_v40, 0.0 }
  0xff   :  { %v353_v51 = vmax.f32 %v344_v47, 0.0  ;;  %v647_v47 = vadd.f32 %v646_v46, %v645_v45 }
 0x100   :  { %v750_v52 = vpack.c.bf16 %v352_v49, %v350_v48  ;;  %v126_v49 = vrot.slane %v124_v44, 1 }
 0x101   :  { %v748_v53 = vpack.c.bf16 %v353_v51, %v351_v50  ;;  %v74_v50 = vpop.xlane.xlu1 %73  ;;  %v60_v51 = vpop.xlane.xlu0 %59  ;;  %648 = vadd.xlane.f32.xlu0 %v647_v47 }
 0x103   :  { %749 = vmatprep.subr.bf16.mxu1 %v748_v53  ;;  %v62_v53 = vrot.slane %v60_v51, 2 }
 0x104   :  { %751 = vmatpush1.bf16.msra.mxu1 %v750_v52  ;;  %v76_v52 = vrot.slane %v74_v50, 2 }
 0x107   :  { %716 = vmatmul.mubr.msk.f32.vlgmr.msra.gmra.mrb[0].mxu1 %vm374_vm5, %v354_v54 }
 0x108   :  { %457 = vmatprep.mubr.f32.mxu1 %v826_v7 }
 0x10b   :  { %717 = vmatmul.mubr.msk.f32.gmra.mrb[2].mxu1 %vm374_vm5, %v355_v55  ;;  %v128_v55 = vadd.f32 %v126_v49, %v124_v44 }
 0x10c   :  { %463 = vmatprep.mubr.f32.mxu1 %v826_v7 }
 0x10d   :  { %v129_v59 = vmul.f32 %v128_v55, %v994_v18 }
 0x10f   :  { %718 = vmatmul.mubr.msk.f32.gmra.mrb[4].mxu1 %vm374_vm5, %v356_v56  ;;  %v78_v56 = vsel %vm64_vm8, %v76_v52, 0.0 }
 0x110   :  { %469 = vmatprep.mubr.f32.mxu1 %v826_v7  ;;  %v150_v7 = vmin.f32 %v141_v62, %v148_v63  ;;  %v79_v60 = vrot.slane %v78_v56, 4  ;;  %v1060_v62 = vpop.xlane.xlu1 %116  ;;  %v96_v63 = vpop.xlane.xlu0 %95 }
 0x111   :  { %v98_v0 = vrot.slane %v96_v63, 2 }
 0x112   :  { %v155_v5 = vsub.f32 %v150_v7, %v154_v3  ;;  %v130_v7 = vsel %vm114_vm2, %v129_v59, 0.0  ;;  %v80_v3 = vadd.f32 %v79_v60, %v78_v56 }
 0x113   :  { %719 = vmatmul.mubr.msk.f32.gmra.mrb[6].mxu1 %vm374_vm5, %v357_v57  ;;  %v65_v57 = vsel %vm64_vm8, %v62_v53, 0.0  ;;  %131 = vadd.xlane.f32.xlu0 %v130_v7 }
 0x114   :  { %v156_v9 = vmax.f32 %v155_v5, 0.0  ;;  %v66_v61 = vrot.slane %v65_v57, 4  ;;  %v81_v5 = vrot.slane %v80_v3, 2  ;;  %v93_v6 = vpop.xlane.xlu1 %92 }
 0x116   :  { %v158_v13 = vrot.slane %v156_v9, 1  ;;  %v67_v4 = vadd.f32 %v66_v61, %v65_v57  ;;  %v82_v10 = vadd.f32 %v81_v5, %v80_v3 }
 0x118   :  { %v160_v16 = vmul.f32 %v158_v13, %v156_v9  ;;  %v100_v9 = vsub.f32 %v93_v6, %v98_v0  ;;  %v83_v13 = vrot.slane %v82_v10, 1 }
 0x11a   :  { %v165_v20 = vsub.f32 %v164_v17, %v160_v16  ;;  %v101_v11 = vand.u32 2147483647, %v100_v9  ;;  %v84_v14 = vadd.f32 %v83_v13, %v82_v10 }
 0x11c   :  { %v166_v23 = vmax.f32 %v165_v20, 1e-12  ;;  %v176_v33 = vsub.f32 %v175_v21, %v165_v20  ;;  %v103_v8 = vsel %vm102_vm9, %v101_v11, 0.0 }
 0x11e   :  { %776 = vrcp.f32 %v166_v23 }
 0x11f   :  { %778 = vrcp.f32 %v177_v24  ;;  %v1065_v24 = vand.u32 127, %v562_v27 }
 0x120   :  { %780 = vrcp.f32 %v84_v14 }
 0x121   :  { %vm665_vm10 = vcmp.eq.s32.totalorder %v1065_v24, 0  ;;  %vm671_vm11 = vcmp.eq.s32.totalorder %v1065_v24, 2  ;;  %vm668_vm12 = vcmp.eq.s32.totalorder %v1065_v24, 1  ;;  %vm674_vm13 = vcmp.eq.s32.totalorder %v1065_v24, 3 }
 0x122   :  { %vm677_vm14 = vcmp.eq.s32.totalorder %v1065_v24, 4  ;;  %vm685_vm15 = vcmp.eq.s32.totalorder %v1065_v24, 5 }
 0x128   :  { %v777_v34 = vpop.eup %776 }
 0x129   :  { %v779_v39 = vpop.eup %778  ;;  %v168_v42 = vmul.f32 %v777_v34, %v160_v16  ;;  %v104_v16 = vrot.slane %v103_v8, 4 }
 0x12a   :  { %v179_v43 = vmul.f32 %v779_v39, %v176_v33  ;;  %v781_v38 = vpop.eup %780 }
 0x12b   :  { %v105_v19 = vadd.f32 %v104_v16, %v103_v8 }
 0x12c   :  { %v180_v48 = vsub.f32 %v168_v42, %v179_v43 }
 0x12d   :  { %v106_v20 = vrot.slane %v105_v19, 2 }
 0x12e   :  { %v181_v54 = vsub.f32 1.0, %v180_v48 }
 0x12f   :  { %v107_v23 = vadd.f32 %v106_v20, %v105_v19 }
 0x130   :  { %v182_v58 = vmul.f32 %v181_v54, %v994_v18  ;;  %v68_v18 = vrot.slane %v67_v4, 2 }
 0x131   :  { %v108_v30 = vrot.slane %v107_v23, 1 }
 0x132   :  { %v183_v2 = vsel %vm114_vm2, %v182_v58, 0.0  ;;  %v69_v17 = vadd.f32 %v68_v18, %v67_v4 }
 0x133   :  { %184 = vadd.xlane.f32.xlu1 %v183_v2  ;;  %v109_v34 = vadd.f32 %v108_v30, %v107_v23 }
 0x134   :  { %v70_v21 = vrot.slane %v69_v17, 1 }
 0x135   :  { %v1067_v39 = vmul.f32 0.0625, %v109_v34 }
 0x136   :  { %v71_v33 = vadd.f32 %v70_v21, %v69_v17 }
 0x137   :  { %680 = vperm.xlu0 %766, %v1067_v39  }
 0x138   :  { %v1070_v40 = vmul.f32 %v781_v38, %v71_v33 }
 0x13a   :  { %v1074_v41 = vsel %vm665_vm10, %v1070_v40, 0.0 }
 0x1da   :  { %v453_v42 = vpop.f32.mrb[0].mxu1 }
 0x1db   :  { %v454_v43 = vadd.f32 %v453_v42, %v1026_v15  ;;  %v455_v27 = vpop.f32.mrb[1].mxu1 }
 0x1dc   :  { %v456_v44 = vadd.f32 %v455_v27, %v1026_v15 }
 0x1dd   :  { %v476_v47 = vmax.f32 %v454_v43, 0.0 }
 0x1de   :  { %v477_v45 = vmax.f32 %v456_v44, 0.0  ;;  %v459_v46 = vpop.f32.mrb[2].mxu1 }
 0x1df   :  { %v460_v48 = vadd.f32 %v459_v46, %v1022_v1  ;;  %v461_v49 = vpop.f32.mrb[3].mxu1  ;;  %v500_v55 = vmul.f32 %v1028_v22, %v476_v47 }
 0x1e0   :  { %v462_v50 = vadd.f32 %v461_v49, %v1022_v1  ;;  %v501_v52 = vmul.f32 %v1028_v22, %v477_v45 }
 0x1e1   :  { %v478_v51 = vmax.f32 %v460_v48, 0.0 }
 0x1e2   :  { %v479_v53 = vmax.f32 %v462_v50, 0.0  ;;  %v465_v54 = vpop.f32.mrb[4].mxu1  ;;  %v517_v1 = vsel %vm374_vm5, %v501_v52, 0.0 }
 0x1e3   :  { %v502_v56 = vmul.f32 %v1034_v28, %v478_v51  ;;  %v466_v57 = vadd.f32 %v465_v54, %v1024_v12  ;;  %v467_v15 = vpop.f32.mrb[5].mxu1 }
 0x1e4   :  { %v503_v58 = vmul.f32 %v1034_v28, %v479_v53  ;;  %v468_v59 = vadd.f32 %v467_v15, %v1024_v12 }
 0x1e5   :  { %v508_v60 = vadd.f32 %v502_v56, %v500_v55  ;;  %v480_v61 = vmax.f32 %v466_v57, 0.0 }
 0x1e6   :  { %v518_v63 = vsel %vm374_vm5, %v503_v58, 0.0  ;;  %v481_v0 = vmax.f32 %v468_v59, 0.0  ;;  %v471_v2 = vpop.f32.mrb[6].mxu1 }
 0x1e7   :  { %v519_v7 = vadd.f32 %v518_v63, %v517_v1  ;;  %v504_v22 = vmul.f32 %v1032_v26, %v480_v61  ;;  %v472_v3 = vadd.f32 %v471_v2, %v1030_v25  ;;  %v473_v4 = vpop.f32.mrb[7].mxu1  ;;  %v831_v63 = vmov 1966171168  }
 0x1e8   :  { %v505_v5 = vmul.f32 %v1032_v26, %v481_v0  ;;  %v474_v28 = vadd.f32 %v473_v4, %v1030_v25  ;;  %v560_v0 = vunpack.c.l.s4 %v831_v63 }
 0x1e9   :  { %v509_v6 = vadd.f32 %v508_v60, %v504_v22  ;;  %v482_v12 = vmax.f32 %v472_v3, 0.0 }
 0x1ea   :  { %v520_v9 = vsel %vm374_vm5, %v505_v5, 0.0  ;;  %v483_v10 = vmax.f32 %v474_v28, 0.0  ;;  %v561_v3 = vunpack.c.0.s8 %v560_v0 }
 0x1eb   :  { %v521_v18 = vadd.f32 %v520_v9, %v519_v7  ;;  %v506_v11 = vmul.f32 %v1041_v35, %v482_v12 }
 0x1ec   :  { %v507_v13 = vmul.f32 %v1041_v35, %v483_v10 }
 0x1ed   :  { %v510_v8 = vadd.f32 %v509_v6, %v506_v11 }
 0x1ee   :  { %v522_v14 = vsel %vm374_vm5, %v507_v13, 0.0 }
 0x1ef   :  { %v511_v16 = vrot.slane %v510_v8, 4  ;;  %v523_v17 = vadd.f32 %v522_v14, %v521_v18  ;;  %v564_v14 = vsub.s32 %v561_v3, %v1037_v29 }
 0x1f1   :  { %v512_v19 = vadd.f32 %v511_v16, %v510_v8  ;;  %v524_v20 = vrot.slane %v523_v17, 4 }
 0x1f3   :  { %v513_v26 = vrot.slane %v512_v19, 2  ;;  %v525_v21 = vadd.f32 %v524_v20, %v523_v17  ;;  %v710_v20 = vld [vmem:[%s1132_s2 + $0xc0] ss:$8 sm:$0x3]  ;;  %s832_s2 = smov [#allocation2]  }
 0x1f4   :  { %s701_s25 = sshll.u32 %s832_s2, 4  ;;  %s702_s25 = int_to_ptr.vmem [resolvable:$true] %s701_s25 }
 0x1f5   :  { %v514_v25 = vadd.f32 %v513_v26, %v512_v19  ;;  %v526_v23 = vrot.slane %v525_v21, 2  ;;  %s802_s26 = scalar_lea.vmem %s702_s25, 16  ;;  %s806_s27 = scalar_lea.vmem %s702_s25, 32 }
 0x1f6   :  { %p803_p0 = scmp.ne.s32.totalorder %s702_s25, %s802_s26  ;;  %p807_p1 = scmp.lt.s32.totalorder %s702_s25, %s702_s25 }
 0x1f7   :  { %v515_v30 = vrot.slane %v514_v25, 1  ;;  %v527_v33 = vadd.f32 %v526_v23, %v525_v21  ;;  %v575_v23 = vsub.f32 1.0, %v710_v20  ;;  %p808_p2 = scmp.lt.s32.totalorder %s806_s27, %s802_s26 }
 0x1f9   :  { %v516_v34 = vadd.f32 %v515_v30, %v514_v25  ;;  %v528_v38 = vrot.slane %v527_v33, 1  ;;  %p809_p3 = por %p808_p2, %p807_p1 }
 0x1fb   :  { %v529_v42 = vadd.f32 %v528_v38, %v527_v33  ;;  %v534_v43 = vadd.f32 %v1043_v36, %v516_v34  ;;  %v119_v33 = vmax.f32 %v1060_v62, 1.0  ;;  %p810_p4 = pnand %p809_p3, %p803_p0 }
 0x1fd   :  { %v535_v35 = vadd.f32 %v1043_v36, %v529_v42  ;;  %v536_v27 = vsub.f32 0.0, %v534_v43  ;;  %v578_v44 = vand.u32 2147483647, %v534_v43  ;;  %v576_v6 = vmax.f32 %v534_v43, 0.0 }
 0x1ff   :  { %v537_v45 = vsub.f32 0.0, %v535_v35  ;;  %v540_v46 = vand.u32 2147483647, %v536_v27  ;;  %v579_v47 = vand.u32 2147483647, %v535_v35  ;;  %v580_v48 = vsub.f32 0.0, %v578_v44 }
 0x200   :  { %v577_v12 = vmax.f32 %v535_v35, 0.0  ;;  %v538_v10 = vmax.f32 %v536_v27, 0.0 }
 0x201   :  { %v541_v49 = vand.u32 2147483647, %v537_v45  ;;  %v542_v50 = vsub.f32 0.0, %v540_v46  ;;  %v581_v51 = vsub.f32 0.0, %v579_v47  ;;  %v582_v52 = vmul.f32 1.442695, %v580_v48  ;;  %v649_v48 = vpop.xlane.xlu0 %648 }
 0x202   :  { %v539_v18 = vmax.f32 %v537_v45, 0.0 }
 0x203   :  { %v543_v53 = vsub.f32 0.0, %v541_v49  ;;  %v544_v54 = vmul.f32 1.442695, %v542_v50  ;;  %782 = vpow2.f32 %v582_v52  ;;  %v584_v55 = vmul.f32 1.442695, %v581_v51  ;;  %v185_v49 = vpop.xlane.xlu1 %184 }
 0x205   :  { %784 = vpow2.f32 %v544_v54  ;;  %v546_v56 = vmul.f32 1.442695, %v543_v53 }
 0x206   :  { %786 = vpow2.f32 %v584_v55 }
 0x207   :  { %788 = vpow2.f32 %v546_v56 }
 0x20d   :  { %v783_v57 = vpop.eup %782 }
 0x20e   :  { %v586_v15 = vadd.f32 1.0, %v783_v57 }
 0x20f   :  { %v785_v36 = vpop.eup %784 }
 0x210   :  { %v787_v58 = vpop.eup %786  ;;  %v548_v59 = vadd.f32 1.0, %v785_v36  ;;  %790 = vlog2.f32 %v586_v15  ;;  %v651_v36 = vmax.f32 %v649_v48, 1.0 }
 0x211   :  { %v789_v60 = vpop.eup %788  ;;  %v587_v61 = vadd.f32 1.0, %v787_v58 }
 0x212   :  { %v549_v1 = vadd.f32 1.0, %v789_v60  ;;  %792 = vlog2.f32 %v548_v59 }
 0x213   :  { %794 = vlog2.f32 %v587_v61 }
 0x214   :  { %796 = vlog2.f32 %v549_v1 }
 0x215   :  { %798 = vrcp.f32 %v119_v33 }
 0x216   :  { %800 = vrcp.f32 %v651_v36 }
 0x21a   :  { %v791_v2 = vpop.eup %790 }
 0x21b   :  { %v589_v22 = vmul.f32 0.6931472, %v791_v2 }
 0x21c   :  { %v793_v7 = vpop.eup %792 }
 0x21d   :  { %v795_v4 = vpop.eup %794  ;;  %v551_v5 = vmul.f32 0.6931472, %v793_v7  ;;  %v592_v13 = vadd.f32 %v589_v22, %v576_v6 }
 0x21e   :  { %v797_v28 = vpop.eup %796  ;;  %v591_v9 = vmul.f32 0.6931472, %v795_v4 }
 0x21f   :  { %v553_v11 = vmul.f32 0.6931472, %v797_v28  ;;  %v554_v16 = vadd.f32 %v551_v5, %v538_v10  ;;  %v799_v62 = vpop.eup %798 }
 0x220   :  { %v593_v8 = vadd.f32 %v591_v9, %v577_v12  ;;  %v187_v50 = vmul.f32 %v799_v62, %v185_v49  ;;  %v801_v15 = vpop.eup %800 }
 0x221   :  { %v555_v17 = vadd.f32 %v553_v11, %v539_v18 }
 0x222   :  { %v596_v19 = vcombine.low %v592_v13, %v593_v8  ;;  %v654_v29 = vmul.f32 2.0, %v187_v50 }
 0x223   :  { %v558_v26 = vcombine.low %v554_v16, %v555_v17 }
 0x224   :  { %v603_v21 = vrot.slane %v596_v19, %v564_v14 }
 0x225   :  { %v565_v25 = vrot.slane %v558_v26, %v564_v14 }
 0x226   :  { %v610_v30 = vrot.slane %v603_v21, %v564_v14 }
 0x227   :  { %v572_v34 = vrot.slane %v565_v25, %v564_v14 }
 0x228   :  { %v612_v42 = vmul.f32 %v610_v30, %v575_v23 }
 0x229   :  { %v574_v38 = vmul.f32 %v710_v20, %v572_v34 }
 0x22b   :  { %v613_v43 = vadd.f32 %v612_v42, %v574_v38 }
 0x22d   :  { %v614_v35 = vmul.f32 %v1048_v37, %v613_v43  ;;  %v132_v37 = vpop.xlane.xlu0 %131 }
 0x22e   :  { %v135_v51 = vmul.f32 %v799_v62, %v132_v37 }
 0x22f   :  { %v619_v27 = vrot.slane %v614_v35, %v618_v31  ;;  %v623_v44 = vrot.slane %v614_v35, %v622_v32  ;;  %v656_v31 = vmul.f32 3.0, %v1070_v40  ;;  %v672_v32 = vsel %vm671_vm11, %v187_v50, 0.0 }
 0x230   :  { %v658_v52 = vmul.f32 5.0, %v135_v51  ;;  %v669_v53 = vsel %vm668_vm12, %v135_v51, 0.0 }
 0x231   :  { %v627_v45 = vsel %vm626_vm6, %v619_v27, 0.0  ;;  %v629_v46 = vsel %vm628_vm7, %v623_v44, 0.0  ;;  %v670_v54 = vadd.f32 %v669_v53, %v1074_v41  ;;  %v657_v55 = vadd.f32 %v656_v31, %v654_v29  ;;  %v681_v59 = vpop.permute.xlu0 %680 }
 0x232   :  { %v630_v47 = vadd.f32 %v629_v46, %v627_v45  ;;  %v683_v1 = vsel %vm677_vm14, %v681_v59, 0.0 }
 0x233   :  { %v673_v56 = vadd.f32 %v672_v32, %v670_v54  ;;  %v659_v57 = vadd.f32 %v658_v52, %v657_v55 }
 0x234   :  { %631 = vadd.xlane.f32.xlu1 %v630_v47 }
 0x2c1   :  { %v632_v58 = vpop.xlane.xlu1 %631 }
 0x2c2   :  { %v653_v40 = vmul.f32 %v801_v15, %v632_v58 }
 0x2c4   :  { %v660_v60 = vmul.f32 4.0, %v653_v40  ;;  %v675_v61 = vsel %vm674_vm13, %v653_v40, 0.0 }
 0x2c5   :  { %v676_v63 = vadd.f32 %v675_v61, %v673_v56 }
 0x2c6   :  { %v661_v0 = vadd.f32 %v660_v60, %v659_v57 }
 0x2c7   :  { %v684_v2 = vadd.f32 %v683_v1, %v676_v63 }
 0x2c8   :  { %v662_v41 = vadd.f32 %v661_v0, %v1067_v39 }
 0x2ca   :  { %688 = vperm.xlu1 %767, %v662_v41  }
 0x349   :  { %v689_v7 = vpop.permute.xlu1 %688 }
 0x34a   :  { %v691_v22 = vsel %vm685_vm15, %v689_v7, 0.0 }
 0x34b   :  { %v692_v3 = vadd.f32 %v691_v22, %v684_v2 }
 0x34d   :  { %694 = vst.msk [vmem:[#allocation2] sm:$0x1] %vm693_vm0, %v692_v3 }
 0x34e   :  { %813 = shalt.err (!%p810_p4)
}
 0x34f   :  { %s814_s30 = scalar_lea.hbm %s1136_s6, 16 }
 0x350   :  { %p815_p5 = scmp.ne.s32.totalorder %s1136_s6, %s814_s30  ;;  %p818_p6 = scmp.lt.u32.totalorder %s814_s30, %s1136_s6 }
 0x352   :  { %p820_p7 = pnand %p818_p6, %p815_p5 }
 0x354   :  { %823 = shalt.err (!%p820_p7)
}
 0x355   :  { %704 = dma.vmem_to_hbm [thread:$0]  %s702_s25, 16, %s1136_s6, [#allocation3]  }
 0x356   :  { %824 = dma.done.wait [#allocation3], 16  }
 0x357   :  { %825 = vsyncadd [#allocation3], 4294967280 }
 0x358   :  { %708 = vsyncpa [#allocation3], 1 }

</bundles_post_ra>
